<compile_context>
chip_gen: v5e
topology: v5e:2x2
jax: 0.10.0
libtpu: 0.0.40
codegen_flags: <defaults>
</compile_context>

<pallas_src>
import jax
import jax.numpy as jnp
from jax.experimental import pallas as pl
from jax.experimental.pallas import tpu as pltpu


def _round_up(x, m):
    return ((x + m - 1) // m) * m


def _output_layer_kernel(x_ref, w_ref, b_ref, o_ref, m_ref, l_ref):
    """Grid axis 0 tiles the (padded) output dimension O.

    x_ref : (B, 2H_pad)    input rows (bf16), same block every step
    w_ref : (2H_pad, tO)   pre-transposed weight tile (bf16), lane-dense on O
    b_ref : (1, tO)        bias tile (f32, padded O lanes = -1e30)
    o_ref : (B, O_pad) f32 resident output block; raw logits until the last
                           step, then log-probabilities.
    m_ref : (B, 1) f32     running max      (online LSE)
    l_ref : (B, 1) f32     running sum-exp  (online LSE)
    """
    j = pl.program_id(0)
    n_j = pl.num_programs(0)
    t_o = w_ref.shape[1]

    @pl.when(j == 0)
    def _():
        m_ref[...] = jnp.full_like(m_ref, -jnp.inf)
        l_ref[...] = jnp.zeros_like(l_ref)

    # Plain MXU matmul over the (zero-padded) shared 2H axis; f32 accumulate.
    logits = jnp.dot(x_ref[...], w_ref[...],
                     preferred_element_type=jnp.float32) + b_ref[...]  # (B,tO)

    off = pl.multiple_of(j * t_o, 128)
    o_ref[:, pl.ds(off, t_o)] = logits

    # Online log-sum-exp update (overlaps with the pipelined weight DMA).
    m_old = m_ref[...]
    m_new = jnp.maximum(m_old, jnp.max(logits, axis=-1, keepdims=True))
    l_ref[...] = (jnp.exp(m_old - m_new) * l_ref[...]
                  + jnp.sum(jnp.exp(logits - m_new), axis=-1, keepdims=True))
    m_ref[...] = m_new

    # Finalize: subtract log-sum-exp from the stored raw logits.
    @pl.when(j == n_j - 1)
    def _():
        o_ref[...] = o_ref[...] - (m_ref[...] + jnp.log(l_ref[...]))


def prepare_params(weight, bias, *, param_dtype=jnp.bfloat16, tile_o=None):
    """One-time parameter preparation (do NOT call per forward).

    weight : (O, 2H) PyTorch nn.Linear layout.  Transposed ONCE to
             (2H_pad, O_pad) `param_dtype`, so kernel weight tiles are
             lane-dense along O and MXU-native (no per-step relayout).
    bias   : (O,) kept f32; padded O lanes get -1e30 so they vanish in the
             log-sum-exp (padded columns are sliced off after the call).
    tile_o : optional O tile size (rounded up to a multiple of 128); default
             targets ~2 MiB of weight bytes per grid step.
    Returns (w_t_pad, b_pad, out_size, t_o).
    """
    out_size, two_h = weight.shape
    itemsize = jnp.dtype(param_dtype).itemsize
    two_h_pad = _round_up(two_h, 128)
    o_pad = _round_up(out_size, 128)

    if tile_o is None:
        target_bytes = 2 * 1024 * 1024                # ~2 MiB weights / step
        tile_o = max(128, target_bytes // (two_h_pad * itemsize))
    t_o = min(_round_up(int(tile_o), 128), o_pad)
    assert t_o % 128 == 0, "O tile must be a multiple of 128"
    o_pad = _round_up(o_pad, t_o)

    w_t_pad = jnp.zeros((two_h_pad, o_pad), param_dtype)
    w_t_pad = w_t_pad.at[:two_h, :out_size].set(weight.T.astype(param_dtype))

    b_pad = jnp.full((1, o_pad), -1e30, jnp.float32)
    b_pad = b_pad.at[0, :out_size].set(bias.astype(jnp.float32))
    return w_t_pad, b_pad, out_size, t_o


def _vmem_limit_bytes(b_rows, two_h_pad, o_pad, t_o, w_itemsize):
    """Scoped-VMEM budget derived from the actual buffers (+ headroom)."""
    buf = (2 * two_h_pad * t_o * w_itemsize        # double-buffered W^T tile
           + 2 * t_o * 4                           # double-buffered bias tile
           + 2 * b_rows * two_h_pad * w_itemsize   # x block
           + 2 * b_rows * o_pad * 4                # resident output block
           + 4 * b_rows * 4)                       # (m, l) scratch
    limit = int(buf * 1.25) + (2 << 20)
    # Stay well under v7x's 64 MiB physical VMEM; never below a sane floor.
    return max(16 << 20, min(limit, 48 << 20))


def _linear_log_softmax(x2d_pad, w_t_pad, b_pad, out_size, t_o):
    """(B, 2H_pad) x prepared params -> (B, out_size) f32 log-probs."""
    b_rows, two_h_pad = x2d_pad.shape
    o_pad = w_t_pad.shape[1]
    grid = (o_pad // t_o,)

    w_itemsize = jnp.dtype(w_t_pad.dtype).itemsize
    x_itemsize = jnp.dtype(x2d_pad.dtype).itemsize
    cost = pl.CostEstimate(
        flops=2 * b_rows * two_h_pad * o_pad,
        transcendentals=b_rows * o_pad,
        bytes_accessed=(two_h_pad * o_pad * w_itemsize
                        + b_rows * two_h_pad * x_itemsize
                        + o_pad * 4
                        + b_rows * o_pad * 4),
    )

    out = pl.pallas_call(
        _output_layer_kernel,
        out_shape=jax.ShapeDtypeStruct((b_rows, o_pad), jnp.float32),
        grid_spec=pltpu.PrefetchScalarGridSpec(
            num_scalar_prefetch=0,
            grid=grid,
            in_specs=[
                pl.BlockSpec((b_rows, two_h_pad), lambda j: (0, 0)),  # x rows
                pl.BlockSpec((two_h_pad, t_o), lambda j: (0, j)),     # W^T tile
                pl.BlockSpec((1, t_o), lambda j: (0, j)),             # bias tile
            ],
            # Same block index every step -> output stays resident in VMEM
            # across the O axis (holds raw logits, then log-probs).
            out_specs=pl.BlockSpec((b_rows, o_pad), lambda j: (0, 0)),
            scratch_shapes=[pltpu.VMEM((b_rows, 1), jnp.float32),   # m
                            pltpu.VMEM((b_rows, 1), jnp.float32)],  # l
        ),
        compiler_params=pltpu.CompilerParams(
            # O axis is a reduction (online LSE, output-resident).
            dimension_semantics=("arbitrary",),
            vmem_limit_bytes=_vmem_limit_bytes(b_rows, two_h_pad, o_pad, t_o,
                                               w_itemsize),
        ),
        cost_estimate=cost,
    )(x2d_pad, w_t_pad, b_pad)

    return out[:, :out_size]


def output_layer_forward(input_, w_t_pad, b_pad, out_size, t_o):
    """Equivalent of OutPutLayer.forward in eval mode.

    input_ : any shape whose total size == hidden_size * 2
             (PyTorch's input_.view(1, -1)).
    Dropout(p=0.2) is identity in eval mode.
    Returns (1, out_size) float32 log-probabilities.
    """
    two_h_pad = w_t_pad.shape[0]
    x2d = jnp.reshape(input_, (1, -1)).astype(w_t_pad.dtype)
    two_h = x2d.shape[1]
    # Zero-pad the contraction dim to the lane-dense padded K (zero columns
    # contribute nothing to the matmul).
    x2d_pad = jnp.zeros((1, two_h_pad), w_t_pad.dtype).at[:, :two_h].set(x2d)
    return _linear_log_softmax(x2d_pad, w_t_pad, b_pad, out_size, t_o)


if __name__ == "__main__":
    hidden_size = 32
    output_size = 16
    two_h = hidden_size * 2

    key = jax.random.PRNGKey(0)
    kx, kw, kb = jax.random.split(key, 3)

    # Deterministic params mimicking nn.Linear's U(-bound, +bound).
    bound = 1.0 / (two_h ** 0.5)
    weight = jax.random.uniform(kw, (output_size, two_h), jnp.float32,
                                minval=-bound, maxval=bound)
    bias = jax.random.uniform(kb, (output_size,), jnp.float32,
                              minval=-bound, maxval=bound)

    # One-time parameter prep: transpose -> (2H_pad, O_pad) bf16, padded bias.
    w_t_pad, b_pad, o_size, t_o = prepare_params(weight, bias)

    # Example input: (1, 2, 32) -> view(1, -1) -> (1, 64)
    x = jax.random.normal(kx, (1, 2, hidden_size), jnp.float32)

    out = output_layer_forward(x, w_t_pad, b_pad, o_size, t_o)
    out = jax.block_until_ready(out)

    # Reference (same bf16-cast operands, f32 math) for numerics check.
    x2d = jnp.reshape(x, (1, -1)).astype(jnp.bfloat16).astype(jnp.float32)
    w_f32 = weight.astype(jnp.bfloat16).astype(jnp.float32)
    ref_logits = x2d @ w_f32.T + bias[None, :]
    ref = jax.nn.log_softmax(ref_logits, axis=-1)

    assert out.shape == (1, output_size)
    assert bool(jnp.all(jnp.isfinite(out)))
    assert abs(float(jnp.sum(jnp.exp(out))) - 1.0) < 1e-4
    assert bool(jnp.allclose(out, ref, atol=2e-4, rtol=2e-4))

    print("KERNEL_OK")
</pallas_src>

<mosaic_0001>
module attributes {stable_mosaic.version = 11 : i64} {
  func.func @_output_layer_kernel(%arg0: i32, %arg1: memref<1x128xbf16, #tpu.memory_space<vmem>>, %arg2: memref<128x128xbf16, #tpu.memory_space<vmem>>, %arg3: memref<1x128xf32, #tpu.memory_space<vmem>>, %arg4: memref<1x128xf32, #tpu.memory_space<vmem>>, %arg5: memref<1x1xf32, #tpu.memory_space<vmem>>, %arg6: memref<1x1xf32, #tpu.memory_space<vmem>>) attributes {dimension_semantics = [#tpu.dimension_semantics<arbitrary>], iteration_bounds = array<i64: 1>, scalar_prefetch = 0 : i64, scratch_operands = 2 : i64, tpu.core_type = #tpu.core_type<tc>, window_params = [{pipeline_mode = #tpu.pipeline_mode<synchronous>, transform_indices = @transform_0, window_bounds = array<i64: 1, 128>}, {transform_indices = @transform_1, window_bounds = array<i64: 128, 128>}, {transform_indices = @transform_2, window_bounds = array<i64: 1, 128>}, {pipeline_mode = #tpu.pipeline_mode<synchronous>, transform_indices = @transform_3, window_bounds = array<i64: 1, 128>}]} {
    %c0_i32 = arith.constant 0 : i32
    %0 = arith.cmpi eq, %arg0, %c0_i32 : i32
    %1 = arith.extui %0 : i1 to i32
    %c0_i32_0 = arith.constant 0 : i32
    %2 = arith.cmpi ne, %1, %c0_i32_0 : i32
    scf.if %2 {
      %cst_19 = arith.constant 0xFF800000 : f32
      %31 = vector.broadcast %cst_19 : f32 to vector<1x1xf32>
      %c0_20 = arith.constant 0 : index
      %c0_21 = arith.constant 0 : index
      %32 = vector.load %arg5[%c0_20, %c0_21] : memref<1x1xf32, #tpu.memory_space<vmem>>, vector<1x1xf32>
      tpu.vector_store %arg5[%c0_20, %c0_21], %31 {strides = array<i32>} : memref<1x1xf32, #tpu.memory_space<vmem>>, vector<1x1xf32>,
      %cst_22 = arith.constant 0.000000e+00 : f32
      %33 = vector.broadcast %cst_22 : f32 to vector<1x1xf32>
      %c0_23 = arith.constant 0 : index
      %c0_24 = arith.constant 0 : index
      %34 = vector.load %arg6[%c0_23, %c0_24] : memref<1x1xf32, #tpu.memory_space<vmem>>, vector<1x1xf32>
      tpu.vector_store %arg6[%c0_23, %c0_24], %33 {strides = array<i32>} : memref<1x1xf32, #tpu.memory_space<vmem>>, vector<1x1xf32>,
    } else {
    }
    %c0 = arith.constant 0 : index
    %c0_1 = arith.constant 0 : index
    %3 = vector.load %arg1[%c0, %c0_1] : memref<1x128xbf16, #tpu.memory_space<vmem>>, vector<1x128xbf16>
    %c0_2 = arith.constant 0 : index
    %c0_3 = arith.constant 0 : index
    %4 = vector.load %arg2[%c0_2, %c0_3] : memref<128x128xbf16, #tpu.memory_space<vmem>>, vector<128x128xbf16>
    %cst = arith.constant dense<0.000000e+00> : vector<1x128xf32>
    %5 = tpu.matmul %3, %4, %cst {dimension_numbers = #tpu.dot_dimension_numbers<[1], [0], [0], [1], [0, 0, 1, 1], [], []>} : vector<1x128xbf16>, vector<128x128xbf16>, vector<1x128xf32> -> vector<1x128xf32>
    %c0_4 = arith.constant 0 : index
    %c0_5 = arith.constant 0 : index
    %6 = vector.load %arg3[%c0_4, %c0_5] : memref<1x128xf32, #tpu.memory_space<vmem>>, vector<1x128xf32>
    %7 = arith.addf %5, %6 : vector<1x128xf32>
    %c128_i32 = arith.constant 128 : i32
    %8 = arith.muli %arg0, %c128_i32 : i32
    %9 = tpu.assume_multiple %8, 128 : i32
    %c0_6 = arith.constant 0 : index
    %10 = arith.index_cast %9 : i32 to index
    %11 = vector.load %arg4[%c0_6, %10] : memref<1x128xf32, #tpu.memory_space<vmem>>, vector<1x128xf32>
    tpu.vector_store %arg4[%c0_6, %10], %7 {strides = array<i32>} : memref<1x128xf32, #tpu.memory_space<vmem>>, vector<1x128xf32>,
    %c0_7 = arith.constant 0 : index
    %c0_8 = arith.constant 0 : index
    %12 = vector.load %arg5[%c0_7, %c0_8] : memref<1x1xf32, #tpu.memory_space<vmem>>, vector<1x1xf32>
    %cst_9 = arith.constant dense<0xFF800000> : vector<1xf32>
    %13 = vector.multi_reduction <maximumf>, %7, %cst_9 [1] : vector<1x128xf32> to vector<1xf32>
    %14 = vector.shape_cast %13 : vector<1xf32> to vector<1x1xf32>
    %15 = arith.maximumf %12, %14 : vector<1x1xf32>
    %16 = arith.subf %12, %15 : vector<1x1xf32>
    %17 = math.exp %16 : vector<1x1xf32>
    %c0_10 = arith.constant 0 : index
    %c0_11 = arith.constant 0 : index
    %18 = vector.load %arg6[%c0_10, %c0_11] : memref<1x1xf32, #tpu.memory_space<vmem>>, vector<1x1xf32>
    %19 = arith.mulf %17, %18 : vector<1x1xf32>
    %20 = vector.broadcast %15 : vector<1x1xf32> to vector<1x128xf32>
    %21 = arith.subf %7, %20 : vector<1x128xf32>
    %22 = math.exp %21 : vector<1x128xf32>
    %cst_12 = arith.constant dense<0.000000e+00> : vector<1xf32>
    %23 = vector.multi_reduction <add>, %22, %cst_12 [1] : vector<1x128xf32> to vector<1xf32>
    %24 = vector.shape_cast %23 : vector<1xf32> to vector<1x1xf32>
    %25 = arith.addf %19, %24 : vector<1x1xf32>
    %c0_13 = arith.constant 0 : index
    %c0_14 = arith.constant 0 : index
    %26 = vector.load %arg6[%c0_13, %c0_14] : memref<1x1xf32, #tpu.memory_space<vmem>>, vector<1x1xf32>
    tpu.vector_store %arg6[%c0_13, %c0_14], %25 {strides = array<i32>} : memref<1x1xf32, #tpu.memory_space<vmem>>, vector<1x1xf32>,
    %c0_15 = arith.constant 0 : index
    %c0_16 = arith.constant 0 : index
    %27 = vector.load %arg5[%c0_15, %c0_16] : memref<1x1xf32, #tpu.memory_space<vmem>>, vector<1x1xf32>
    tpu.vector_store %arg5[%c0_15, %c0_16], %15 {strides = array<i32>} : memref<1x1xf32, #tpu.memory_space<vmem>>, vector<1x1xf32>,
    %c0_i32_17 = arith.constant 0 : i32
    %28 = arith.cmpi eq, %arg0, %c0_i32_17 : i32
    %29 = arith.extui %28 : i1 to i32
    %c0_i32_18 = arith.constant 0 : i32
    %30 = arith.cmpi ne, %29, %c0_i32_18 : i32
    scf.if %30 {
      %c0_19 = arith.constant 0 : index
      %c0_20 = arith.constant 0 : index
      %31 = vector.load %arg4[%c0_19, %c0_20] : memref<1x128xf32, #tpu.memory_space<vmem>>, vector<1x128xf32>
      %c0_21 = arith.constant 0 : index
      %c0_22 = arith.constant 0 : index
      %32 = vector.load %arg5[%c0_21, %c0_22] : memref<1x1xf32, #tpu.memory_space<vmem>>, vector<1x1xf32>
      %c0_23 = arith.constant 0 : index
      %c0_24 = arith.constant 0 : index
      %33 = vector.load %arg6[%c0_23, %c0_24] : memref<1x1xf32, #tpu.memory_space<vmem>>, vector<1x1xf32>
      %34 = math.log %33 : vector<1x1xf32>
      %35 = arith.addf %32, %34 : vector<1x1xf32>
      %36 = vector.broadcast %35 : vector<1x1xf32> to vector<1x128xf32>
      %37 = arith.subf %31, %36 : vector<1x128xf32>
      %c0_25 = arith.constant 0 : index
      %c0_26 = arith.constant 0 : index
      %38 = vector.load %arg4[%c0_25, %c0_26] : memref<1x128xf32, #tpu.memory_space<vmem>>, vector<1x128xf32>
      tpu.vector_store %arg4[%c0_25, %c0_26], %37 {strides = array<i32>} : memref<1x128xf32, #tpu.memory_space<vmem>>, vector<1x128xf32>,
    } else {
    }
    return
  }
  func.func @transform_0(%arg0: i32) -> (i32, i32) {
    %c0_i32 = arith.constant 0 : i32
    %c0_i32_0 = arith.constant 0 : i32
    %c0_i32_1 = arith.constant 0 : i32
    return %c0_i32, %c0_i32_0 : i32, i32
  }
  func.func @transform_1(%arg0: i32) -> (i32, i32) {
    %c0_i32 = arith.constant 0 : i32
    %c0_i32_0 = arith.constant 0 : i32
    return %c0_i32, %arg0 : i32, i32
  }
  func.func @transform_2(%arg0: i32) -> (i32, i32) {
    %c0_i32 = arith.constant 0 : i32
    %c0_i32_0 = arith.constant 0 : i32
    return %c0_i32, %arg0 : i32, i32
  }
  func.func @transform_3(%arg0: i32) -> (i32, i32) {
    %c0_i32 = arith.constant 0 : i32
    %c0_i32_0 = arith.constant 0 : i32
    %c0_i32_1 = arith.constant 0 : i32
    return %c0_i32, %c0_i32_0 : i32, i32
  }
}

</mosaic_0001>

<bundles_post_ra>
// kernel: tpu_custom_call.1
= control target key start
LH: loop header
LB: loop body
LE: loop exit
PB: predicated region body
PF: predicated region fallthrough
CT: control target
= control target key end

     0   :  { %8 = vsyncpa [#allocation5], 0  ;;  %s379_s0 = inlined_call_operand.hbm [shape: bf16[1,128], index: 0, kind: input, shape index: {}]   ;;  %s380_s1 = inlined_call_operand.hbm [shape: bf16[128,128], index: 1, kind: input, shape index: {}]   ;;  %s381_s2 = inlined_call_operand.vmem [shape: f32[1,128], index: 2, kind: input, shape index: {}]   ;;  %s382_s3 = inlined_call_operand.hbm [shape: f32[1,128], index: 3, kind: output, shape index: {}]  }
   0x1   :  { %9 = vsyncpa [#allocation8], 0 }
   0x2   :  { %10 = vsyncpa [#allocation6], 0  ;;  %s16_s14 = sshll.u32 %s379_s0, 4  ;;  %s333_s15 = smov [#allocation4]   ;;  %s17_s14 = int_to_ptr.hbm [resolvable:$true] %s16_s14 }
   0x3   :  { %s18_s16 = sshll.u32 %s333_s15, 4  ;;  %s26_s19 = sshll.u32 %s380_s1, 4  ;;  %s19_s16 = int_to_ptr.vmem [resolvable:$true] %s18_s16  ;;  %s27_s19 = int_to_ptr.hbm [resolvable:$true] %s26_s19 }
   0x4   :  { %21 = dma.hbm_to_vmem [thread:$0]  %s17_s14, 16, %s19_s16, [#allocation5]  }
   0x5   :  { %s334_s20 = smov [#allocation7]   ;;  %s335_s22 = smov 64  }
   0x6   :  { %s28_s21 = sshll.u32 %s334_s20, 4  ;;  %s336_s23 = smov 4   ;;  %s29_s21 = int_to_ptr.vmem [resolvable:$true] %s28_s21 }
   0x7   :  { %34 = dma.hbm_to_vmem [thread:$0]  %s27_s19, 1024, %s29_s21, [#allocation8], %s335_s22, %s335_s22, %s336_s23  }
   0x8   :  { %327 = dma.done.wait [#allocation5], 16  }
   0x9   :  { %328 = vsyncadd [#allocation5], 4294967280 }
   0xa   :  { %329 = dma.done.wait [#allocation8], 1024  }
   0xb   :  { %330 = vsyncadd [#allocation8], 4294966272  ;;  %v238_v0 = vld [vmem:[#allocation7 + $0x38] sm:$0xff]  ;;  %v237_v1 = vld [vmem:[#allocation7 + $0x30] sm:$0xff]  ;;  %vm49_vm0 = vcmask 0   ;;  %v337_v9 = vmov -inf  }
   0xc   :  { %118 = vmatpush.bf16.msra.mxu0 %v238_v0  ;;  %v236_v2 = vld [vmem:[#allocation7 + $0x28] sm:$0xff]  ;;  %v235_v3 = vld [vmem:[#allocation7 + $0x20] sm:$0xff]  ;;  %v234_v4 = vld [vmem:[#allocation7 + $0x18] sm:$0xff]  ;;  %50 = vst.msk [vmem:[#allocation2] sm:$0x1] %vm49_vm0, %v337_v9  ;;  %vm137_vm1 = vcmask 1040384  }
   0xd   :  { %v233_v5 = vld [vmem:[#allocation7 + $0x10] sm:$0xff]  ;;  %v232_v6 = vld [vmem:[#allocation7 + $0x8] sm:$0xff]  ;;  %v231_v7 = vld [vmem:[#allocation7] sm:$0xff]  ;;  %v338_v15 = vmov 0   ;;  %v339_v16 = vmov 0.0   ;;  %s187_s27 = sshll.u32 %s382_s3, 4  ;;  %s188_s27 = int_to_ptr.hbm [resolvable:$true] %s187_s27 }
   0xe   :  { %v52_v8 = vld [vmem:[#allocation4] sm:$0x1]  ;;  %v69_v10 = vld [vmem:[%s381_s2] sm:$0x1]  ;;  %247 = vset.pattern.permute.xlu0 %v338_v15  ;;  %248 = vset.pattern.permute.xlu1 %v338_v15  ;;  %51 = vst.msk [vmem:[#allocation3] sm:$0x1] %vm49_vm0, %v339_v16 }
   0xf   :  { %s340_s2 = smov [#allocation9]  }
  0x10   :  { %119 = vmatpush.bf16.msra.mxu0 %v237_v1  ;;  %s185_s24 = sshll.u32 %s340_s2, 4  ;;  %s186_s24 = int_to_ptr.vmem [resolvable:$true] %s185_s24 }
  0x13   :  { %v136_v17 = vld [vmem:[#allocation2] sm:$0x1] }
  0x14   :  { %120 = vmatpush.bf16.msra.mxu0 %v236_v2 }
  0x15   :  { %v145_v29 = vld [vmem:[#allocation3] sm:$0x1] }
  0x18   :  { %121 = vmatpush.bf16.msra.mxu0 %v235_v3 }
  0x1c   :  { %122 = vmatpush.bf16.msra.mxu0 %v234_v4 }
  0x20   :  { %123 = vmatpush.bf16.msra.mxu0 %v233_v5 }
  0x24   :  { %124 = vmatpush.bf16.msra.mxu0 %v232_v6 }
  0x28   :  { %125 = vmatpush.bf16.msra.mxu0 %v231_v7 }
  0x2b   :  { %126 = vmatmul.bf16.vlgmr.msra.gmra.mxu0 %v52_v8 }
  0xa8   :  { %v127_v11 = vpop.f32.mrf.mxu0 }
  0xa9   :  { %v128_v12 = vadd.f32 %v127_v11, %v69_v10 }
  0xab   :  { %135 = vst [vmem:[#allocation9] sm:$0x1] %v128_v12  ;;  %v138_v13 = vsel %vm137_vm1, %v128_v12, -inf }
  0xac   :  { %139 = vmax.xlane.f32.xlu0 %v138_v13 }
  0xb0   :  { %v129_v14 = vpop.f32.mrf.mxu0 }
  0xb2   :  { %v166_v40 = vld [vmem:[#allocation9] sm:$0x1] }
 0x11f   :  { %v140_v18 = vpop.xlane.xlu0 %139 }
 0x120   :  { %v141_v19 = vmax.f32 %v136_v17, %v140_v18 }
 0x122   :  { %v142_v20 = vsub.f32 %v136_v17, %v141_v19  ;;  %162 = vst.msk [vmem:[#allocation2] sm:$0x1] %vm49_vm0, %v141_v19  ;;  %149 = vperm.xlu0 %247, %v141_v19  }
 0x124   :  { %v143_v27 = vmul.f32 1.442695, %v142_v20 }
 0x129   :  { %v167_v36 = vld [vmem:[#allocation2] sm:$0x1] }
 0x194   :  { %v150_v21 = vpop.permute.xlu0 %149 }
 0x195   :  { %v152_v22 = vperm.slane %v150_v21, 0 }
 0x197   :  { %v153_v23 = vsub.f32 %v128_v12, %v152_v22 }
 0x199   :  { %v154_v24 = vmul.f32 1.442695, %v153_v23 }
 0x19b   :  { %249 = vpow2.f32 %v154_v24 }
 0x19c   :  { %251 = vpow2.f32 %v143_v27 }
 0x1a1   :  { %v250_v25 = vpop.eup %249 }
 0x1a2   :  { %v156_v26 = vsel %vm137_vm1, %v250_v25, 0.0  ;;  %v252_v28 = vpop.eup %251 }
 0x1a3   :  { %157 = vadd.xlane.f32.xlu1 %v156_v26  ;;  %v146_v30 = vmul.f32 %v252_v28, %v145_v29 }
 0x216   :  { %v158_v31 = vpop.xlane.xlu1 %157 }
 0x217   :  { %v159_v32 = vadd.f32 %v158_v31, %v146_v30 }
 0x219   :  { %161 = vst.msk [vmem:[#allocation3] sm:$0x1] %vm49_vm0, %v159_v32 }
 0x220   :  { %v168_v33 = vld [vmem:[#allocation3] sm:$0x1] }
 0x221   :  { %253 = vlog2.f32 %v168_v33 }
 0x227   :  { %v254_v34 = vpop.eup %253 }
 0x228   :  { %v170_v35 = vmul.f32 0.6931472, %v254_v34 }
 0x22a   :  { %v171_v37 = vadd.f32 %v170_v35, %v167_v36 }
 0x22c   :  { %174 = vperm.xlu1 %248, %v171_v37  }
 0x29e   :  { %v175_v38 = vpop.permute.xlu1 %174 }
 0x29f   :  { %v177_v39 = vperm.slane %v175_v38, 0 }
 0x2a1   :  { %v178_v41 = vsub.f32 %v166_v40, %v177_v39 }
 0x2a3   :  { %179 = vst [vmem:[#allocation9] sm:$0x1] %v178_v41 }
 0x2a4   :  { %190 = dma.vmem_to_hbm [thread:$0]  %s186_s24, 16, %s188_s27, [#allocation6]  }
 0x2a5   :  { %331 = dma.done.wait [#allocation6], 16  }
 0x2a6   :  { %332 = vsyncadd [#allocation6], 4294967280 }
 0x2a7   :  { %195 = vsyncpa [#allocation5], 1 }
 0x2a8   :  { %196 = vsyncpa [#allocation8], 1 }
 0x2a9   :  { %197 = vsyncpa [#allocation6], 1 }

</bundles_post_ra>
